<compile_context>
chip_gen: v5e
topology: v5e:2x2
jax: 0.10.0
libtpu: 0.0.40
codegen_flags: <defaults>
</compile_context>

<pallas_src>
import functools

import jax
import jax.numpy as jnp
from jax.experimental import pallas as pl
from jax.experimental.pallas import tpu as pltpu


def _round_up(a, b):
    return (a + b - 1) // b * b


def _residual_1x1_kernel(x_ref, w_ref, scale_ref, bias_s_ref, idscale_ref,
                         ident_ref, o_ref, *, shift_n):
    # 1x1 "sparse conv" over the feature matrix == dense matmul of the row
    # tile.  x is widened int8->bf16 in-kernel (exact); w arrives pre-cast to
    # bf16 from the host.  f32 accumulation is exact while |psum| < 2^24
    # (checked host-side), so the cast back to int32 is lossless.
    x = x_ref[...].astype(jnp.bfloat16)
    psum = jnp.dot(x, w_ref[...], preferred_element_type=jnp.float32)
    psum = psum.astype(jnp.int32)

    # Main branch: ((psum + bias) * scale + round_shift) >> n
    # (bias*scale + round_shift is folded host-side into bias_s_ref).
    mul = (psum * scale_ref[...] + bias_s_ref[...]) >> shift_n

    # Identity branch: (id_scale * identity + round_shift) >> n
    round_shift = 1 << (shift_n - 1)
    ident = (idscale_ref[...] * ident_ref[...].astype(jnp.int32)
             + round_shift) >> shift_n

    # Residual add + clamp, stored directly as the module's float features.
    o_ref[...] = jnp.clip(mul + ident, -127, 127).astype(o_ref.dtype)


def tb_module_1x1_residual_fwd(x, w, bias, scale, id_scale, identity,
                               *, shift_n=8, tn=1024):
    """x: (N, IC) int8-valued features; w: (IC, OC) int8-valued weights;
    bias/scale/id_scale: (OC,) ints; identity: (N, OC) int8-valued residual
    features.  Returns float32 (N, OC) clamped to [-127, 127]."""
    N, IC = x.shape
    OC = w.shape[1]

    # Narrow dtypes for the big memory-bound inputs; weight widened to bf16
    # once on the host so the cast is not redone every grid step.
    x = x.astype(jnp.int8)
    identity = identity.astype(jnp.int8)
    w_bf16 = w.astype(jnp.bfloat16)

    # Exactness guard for bf16 x bf16 -> f32 MXU accumulation.
    if 128 * 128 * IC >= (1 << 24):
        raise ValueError("IC too large for exact f32 accumulation of the int "
                         "matmul; use an int8->int32 MXU path instead")

    round_shift = jnp.int32(1 << (shift_n - 1))
    scale_i = scale.astype(jnp.int32).reshape(1, OC)
    idscale_i = id_scale.astype(jnp.int32).reshape(1, OC)
    bias_scaled = bias.astype(jnp.int32).reshape(1, OC) * scale_i + round_shift

    # Row tiling: large tiles amortize the ~0.35us per-grid-step overhead; if
    # all of N fits in one tile, split into two so the "parallel" axis can put
    # one tile on each TensorCore of a v7x megacore.  No host-side padding:
    # the grid ceil-divides N and Pallas masks the ragged last row block
    # (out-of-bounds rows read finite int8 garbage; their output rows are
    # discarded on store).
    tn = _round_up(max(tn, 256), 256)
    if N > tn:
        tn_eff = tn
    else:
        tn_eff = max(8, _round_up(-(-N // 2), 8))
    grid = (pl.cdiv(N, tn_eff),)

    kernel = functools.partial(_residual_1x1_kernel, shift_n=shift_n)

    # NOTE: the w / scale / bias / id_scale specs have constant index maps, so
    # they are DMA'd once and stay resident; pipeline_mode=pl.Buffered(1) on
    # them would save a little VMEM if channel counts ever grow large.
    out = pl.pallas_call(
        kernel,
        out_shape=jax.ShapeDtypeStruct((N, OC), jnp.float32),
        grid_spec=pltpu.PrefetchScalarGridSpec(
            num_scalar_prefetch=0,
            grid=grid,
            in_specs=[
                pl.BlockSpec((tn_eff, IC), lambda i: (i, 0)),   # x row tile (int8)
                pl.BlockSpec((IC, OC), lambda i: (0, 0)),       # weight (bf16, resident)
                pl.BlockSpec((1, OC), lambda i: (0, 0)),        # scale
                pl.BlockSpec((1, OC), lambda i: (0, 0)),        # bias*scale + round_shift
                pl.BlockSpec((1, OC), lambda i: (0, 0)),        # id_scale
                pl.BlockSpec((tn_eff, OC), lambda i: (i, 0)),   # identity row tile (int8)
            ],
            out_specs=pl.BlockSpec((tn_eff, OC), lambda i: (i, 0)),
        ),
        compiler_params=pltpu.CompilerParams(
            dimension_semantics=("parallel",)),
    )(x, w_bf16, scale_i, bias_scaled, idscale_i, identity)

    return out


def _reference(x, w, bias, scale, id_scale, identity, shift_n=8):
    psum = x.astype(jnp.int32) @ w.astype(jnp.int32)
    rs = jnp.int32(1 << (shift_n - 1))
    mul = (psum + bias[None, :].astype(jnp.int32)) * scale[None, :].astype(jnp.int32) + rs
    mul = mul >> shift_n
    ident = id_scale[None, :].astype(jnp.int32) * identity.astype(jnp.int32) + rs
    ident = ident >> shift_n
    return jnp.clip((mul + ident).astype(jnp.float32), -127.0, 127.0)


if __name__ == "__main__":
    # Small synthetic shapes: N active voxels, IC input channels, OC output chans.
    N, IC, OC = 16, 32, 32
    shift_n = 8

    key = jax.random.PRNGKey(0)
    k1, k2, k3, k4, k5, k6 = jax.random.split(key, 6)

    x = jax.random.randint(k1, (N, IC), -8, 8, dtype=jnp.int32).astype(jnp.int8)          # int_inp.F
    w = jax.random.randint(k2, (IC, OC), -4, 4, dtype=jnp.int32).astype(jnp.int8)         # int_weight
    bias = jax.random.randint(k3, (OC,), -64, 64, dtype=jnp.int32)                        # int_bias
    scale = jax.random.randint(k4, (OC,), 1, 16, dtype=jnp.int32)                         # int_scale
    id_scale = jax.random.randint(k5, (OC,), 1, 16, dtype=jnp.int32)                      # int_idscale
    identity = jax.random.randint(k6, (N, OC), -64, 64, dtype=jnp.int32).astype(jnp.int8) # conv1_int_input

    out = tb_module_1x1_residual_fwd(x, w, bias, scale, id_scale, identity,
                                     shift_n=shift_n)
    out = jax.block_until_ready(out)

    ref = _reference(x, w, bias, scale, id_scale, identity, shift_n=shift_n)
    assert out.shape == (N, OC) and out.dtype == jnp.float32
    assert jnp.array_equal(out, ref), "mismatch vs pure-JAX reference"

    print("KERNEL_OK")
</pallas_src>

<mosaic_0001>
module attributes {stable_mosaic.version = 11 : i64} {
  func.func @_residual_1x1_kernel(%arg0: i32, %arg1: memref<8x32xi8, #tpu.memory_space<vmem>>, %arg2: memref<32x32xbf16, #tpu.memory_space<vmem>>, %arg3: memref<1x32xi32, #tpu.memory_space<vmem>>, %arg4: memref<1x32xi32, #tpu.memory_space<vmem>>, %arg5: memref<1x32xi32, #tpu.memory_space<vmem>>, %arg6: memref<8x32xi8, #tpu.memory_space<vmem>>, %arg7: memref<8x32xf32, #tpu.memory_space<vmem>>) attributes {dimension_semantics = [#tpu.dimension_semantics<parallel>], iteration_bounds = array<i64: 2>, scalar_prefetch = 0 : i64, scratch_operands = 0 : i64, tpu.core_type = #tpu.core_type<tc>, window_params = [{transform_indices = @transform_0, window_bounds = array<i64: 8, 32>}, {pipeline_mode = #tpu.pipeline_mode<synchronous>, transform_indices = @transform_1, window_bounds = array<i64: 32, 32>}, {pipeline_mode = #tpu.pipeline_mode<synchronous>, transform_indices = @transform_2, window_bounds = array<i64: 1, 32>}, {pipeline_mode = #tpu.pipeline_mode<synchronous>, transform_indices = @transform_3, window_bounds = array<i64: 1, 32>}, {pipeline_mode = #tpu.pipeline_mode<synchronous>, transform_indices = @transform_4, window_bounds = array<i64: 1, 32>}, {transform_indices = @transform_5, window_bounds = array<i64: 8, 32>}, {transform_indices = @transform_6, window_bounds = array<i64: 8, 32>}]} {
    %c0 = arith.constant 0 : index
    %c0_0 = arith.constant 0 : index
    %0 = vector.load %arg1[%c0, %c0_0] : memref<8x32xi8, #tpu.memory_space<vmem>>, vector<8x32xi8>
    %1 = arith.sitofp %0 : vector<8x32xi8> to vector<8x32xbf16>
    %c0_1 = arith.constant 0 : index
    %c0_2 = arith.constant 0 : index
    %2 = vector.load %arg2[%c0_1, %c0_2] : memref<32x32xbf16, #tpu.memory_space<vmem>>, vector<32x32xbf16>
    %cst = arith.constant dense<0.000000e+00> : vector<8x32xf32>
    %3 = tpu.matmul %1, %2, %cst {dimension_numbers = #tpu.dot_dimension_numbers<[1], [0], [0], [1], [0, 0, 1, 1], [], []>} : vector<8x32xbf16>, vector<32x32xbf16>, vector<8x32xf32> -> vector<8x32xf32>
    %4 = arith.fptosi %3 : vector<8x32xf32> to vector<8x32xi32>
    %c0_3 = arith.constant 0 : index
    %c0_4 = arith.constant 0 : index
    %5 = vector.load %arg3[%c0_3, %c0_4] : memref<1x32xi32, #tpu.memory_space<vmem>>, vector<1x32xi32>
    %6 = vector.broadcast %5 : vector<1x32xi32> to vector<8x32xi32>
    %7 = arith.muli %4, %6 : vector<8x32xi32>
    %c0_5 = arith.constant 0 : index
    %c0_6 = arith.constant 0 : index
    %8 = vector.load %arg4[%c0_5, %c0_6] : memref<1x32xi32, #tpu.memory_space<vmem>>, vector<1x32xi32>
    %9 = vector.broadcast %8 : vector<1x32xi32> to vector<8x32xi32>
    %10 = arith.addi %7, %9 : vector<8x32xi32>
    %c8_i32 = arith.constant 8 : i32
    %11 = vector.broadcast %c8_i32 : i32 to vector<8x32xi32>
    %12 = arith.shrsi %10, %11 : vector<8x32xi32>
    %c0_7 = arith.constant 0 : index
    %c0_8 = arith.constant 0 : index
    %13 = vector.load %arg5[%c0_7, %c0_8] : memref<1x32xi32, #tpu.memory_space<vmem>>, vector<1x32xi32>
    %c0_9 = arith.constant 0 : index
    %c0_10 = arith.constant 0 : index
    %14 = vector.load %arg6[%c0_9, %c0_10] : memref<8x32xi8, #tpu.memory_space<vmem>>, vector<8x32xi8>
    %15 = arith.extsi %14 : vector<8x32xi8> to vector<8x32xi32>
    %16 = vector.broadcast %13 : vector<1x32xi32> to vector<8x32xi32>
    %17 = arith.muli %16, %15 : vector<8x32xi32>
    %c128_i32 = arith.constant 128 : i32
    %18 = vector.broadcast %c128_i32 : i32 to vector<8x32xi32>
    %19 = arith.addi %17, %18 : vector<8x32xi32>
    %c8_i32_11 = arith.constant 8 : i32
    %20 = vector.broadcast %c8_i32_11 : i32 to vector<8x32xi32>
    %21 = arith.shrsi %19, %20 : vector<8x32xi32>
    %22 = arith.addi %12, %21 : vector<8x32xi32>
    %c-127_i32 = arith.constant -127 : i32
    %c127_i32 = arith.constant 127 : i32
    %23 = vector.broadcast %c-127_i32 : i32 to vector<8x32xi32>
    %24 = arith.maxsi %23, %22 : vector<8x32xi32>
    %25 = vector.broadcast %c127_i32 : i32 to vector<8x32xi32>
    %26 = arith.minsi %25, %24 : vector<8x32xi32>
    %27 = arith.sitofp %26 : vector<8x32xi32> to vector<8x32xf32>
    %c0_12 = arith.constant 0 : index
    %c0_13 = arith.constant 0 : index
    %28 = vector.load %arg7[%c0_12, %c0_13] : memref<8x32xf32, #tpu.memory_space<vmem>>, vector<8x32xf32>
    tpu.vector_store %arg7[%c0_12, %c0_13], %27 {strides = array<i32>} : memref<8x32xf32, #tpu.memory_space<vmem>>, vector<8x32xf32>,
    return
  }
  func.func @transform_0(%arg0: i32) -> (i32, i32) {
    %c0_i32 = arith.constant 0 : i32
    %c0_i32_0 = arith.constant 0 : i32
    return %arg0, %c0_i32 : i32, i32
  }
  func.func @transform_1(%arg0: i32) -> (i32, i32) {
    %c0_i32 = arith.constant 0 : i32
    %c0_i32_0 = arith.constant 0 : i32
    %c0_i32_1 = arith.constant 0 : i32
    return %c0_i32, %c0_i32_0 : i32, i32
  }
  func.func @transform_2(%arg0: i32) -> (i32, i32) {
    %c0_i32 = arith.constant 0 : i32
    %c0_i32_0 = arith.constant 0 : i32
    %c0_i32_1 = arith.constant 0 : i32
    return %c0_i32, %c0_i32_0 : i32, i32
  }
  func.func @transform_3(%arg0: i32) -> (i32, i32) {
    %c0_i32 = arith.constant 0 : i32
    %c0_i32_0 = arith.constant 0 : i32
    %c0_i32_1 = arith.constant 0 : i32
    return %c0_i32, %c0_i32_0 : i32, i32
  }
  func.func @transform_4(%arg0: i32) -> (i32, i32) {
    %c0_i32 = arith.constant 0 : i32
    %c0_i32_0 = arith.constant 0 : i32
    %c0_i32_1 = arith.constant 0 : i32
    return %c0_i32, %c0_i32_0 : i32, i32
  }
  func.func @transform_5(%arg0: i32) -> (i32, i32) {
    %c0_i32 = arith.constant 0 : i32
    %c0_i32_0 = arith.constant 0 : i32
    return %arg0, %c0_i32 : i32, i32
  }
  func.func @transform_6(%arg0: i32) -> (i32, i32) {
    %c0_i32 = arith.constant 0 : i32
    %c0_i32_0 = arith.constant 0 : i32
    return %arg0, %c0_i32 : i32, i32
  }
}

</mosaic_0001>

<bundles_post_ra>
// kernel: tpu_custom_call.1
= control target key start
LH: loop header
LB: loop body
LE: loop exit
PB: predicated region body
PF: predicated region fallthrough
CT: control target
= control target key end

     0   :  { %s1113_s0 = inlined_call_operand.hbm [shape: s8[16,32], index: 0, kind: input, shape index: {}]   ;;  %s1114_s1 = inlined_call_operand.hbm [shape: bf16[32,32], index: 1, kind: input, shape index: {}]   ;;  %s1115_s2 = inlined_call_operand.hbm [shape: s32[1,32], index: 2, kind: input, shape index: {}]   ;;  %s1116_s3 = inlined_call_operand.hbm [shape: s32[1,32], index: 3, kind: input, shape index: {}]   ;;  %s1117_s4 = inlined_call_operand.hbm [shape: s32[1,32], index: 4, kind: input, shape index: {}]   ;;  %s1118_s5 = inlined_call_operand.vmem [shape: s8[16,32], index: 5, kind: input, shape index: {}]   ;;  %s1119_s6 = inlined_call_operand.hbm [shape: f32[16,32], index: 6, kind: output, shape index: {}]  }
   0x1   :  { %1120 = sst [smem:[#allocation16_spill]] %s1114_s1 }
   0x2   :  { %11 = vsyncpa [#allocation3], 0 }
   0x3   :  { %13 = vsyncpa [#allocation3 + $0x1], 0 }
   0x4   :  { %14 = vsyncpa [#allocation6], 0 }
   0x5   :  { %15 = vsyncpa [#allocation9], 0 }
   0x6   :  { %16 = vsyncpa [#allocation4], 0 }
   0x7   :  { %18 = vsyncpa [#allocation4 + $0x1], 0  ;;  %s938_s21 = smov 0   ;;  %s940_s22 = smov 0  }
   0x8   :  { %s942_s23 = smov 0   ;;  %s944_s24 = smov 0  }
   0x9 LB: > { %s1121_s1 = sld [smem:[#allocation16_spill]]  ;;  %s962_s28 = sadd.s32 4294967295, %s895_s24   ;;  %s895_s24 = sphi %s944_s24, %s1133_s24   ;;  %s891_s23 = sphi %s942_s23, %s1132_s23   ;;  %s887_s22 = sphi %s940_s22, %s1131_s22   ;;  %s883_s21 = sphi %s938_s21, %s1130_s21  }
   0xa   : > { %p543_p0 = scmp.ge.s32.totalorder %s895_s24, 1  ;;  %p45_p1 = scmp.eq.s32.totalorder %s962_s28, 0 }
   0xb   : > { %p191_p2 = scmp.lt.s32.totalorder %s895_s24, 3  ;;  %s897_s30 = smov [#allocation5]  }
   0xc   : > { %s204_s7 = sshll.u32 %s897_s30, 4  ;;  %s229_s10 = sshll.u32 %s1116_s3, 4  ;;  %s205_s7 = int_to_ptr.vmem [resolvable:$true] %s204_s7  ;;  %s230_s10 = int_to_ptr.hbm [resolvable:$true] %s229_s10 }
   0xd   : > { %p967_p3 = pnand %p543_p0, %p191_p2  ;;  %s217_s14 = sshll.u32 %s1115_s2, 4  ;;  %s218_s14 = int_to_ptr.hbm [resolvable:$true] %s217_s14 }
   0xe   : > { %s898_s15 = smov [#allocation8]   ;;  %s899_s17 = smov 64  }
   0xf   : > { %s202_s27 = sshll.u32 %s1121_s1, 4  ;;  %p599_p4 = pneg %p967_p3  ;;  %s203_s27 = int_to_ptr.hbm [resolvable:$true] %s202_s27 }
  0x10   : > { %s231_s16 = sshll.u32 %s898_s15, 4  ;;  %s900_s18 = smov 4   ;;  %s232_s16 = int_to_ptr.vmem [resolvable:$true] %s231_s16 }
  0x11   : > { %p979_p6 = pnand %p599_p4, %p45_p1  ;;  %s241_s25 = sshll.u32 %s1117_s4, 4  ;;  %s242_s25 = int_to_ptr.hbm [resolvable:$true] %s241_s25 }
  0x12   : > { %s901_s26 = smov [#allocation7]   ;;  %s542_s8 = sadd.s32 4294967294, %s895_s24  }
  0x13   : > { %602 = dma.hbm_to_vmem [thread:$0]  (!%p979_p6), %s203_s27, 256, %s205_s7, [#allocation6], %s899_s17, %s899_s17, %s900_s18  }
  0x14   : > { %608 = dma.hbm_to_vmem [thread:$0]  (!%p979_p6), %s230_s10, 16, %s232_s16, [#allocation9]  }
  0x15   : > { %s219_s30 = sshll.u32 %s901_s26, 4  ;;  %s902_s27 = smov [#allocation10]   ;;  %s220_s30 = int_to_ptr.vmem [resolvable:$true] %s219_s30 }
  0x16   : > { %605 = dma.hbm_to_vmem [thread:$0]  (!%p979_p6), %s218_s14, 16, %s220_s30, [#allocation6]  }
  0x17   : > { %s243_s7 = sshll.u32 %s902_s27, 4  ;;  %s999_s9 = sadd.s32 1, %s895_s24   ;;  %s244_s7 = int_to_ptr.vmem [resolvable:$true] %s243_s7 }
  0x18   : > { %611 = dma.hbm_to_vmem [thread:$0]  (!%p979_p6), %s242_s25, 16, %s244_s7, [#allocation9]  }
  0x19   : > { %s28_s10 = ssub.s32 %s895_s24, %s999_s9  ;;  %s31_s12 = sadd.s32 1, %s891_s23 }
  0x1a   : > { %p29_p7 = scmp.eq.s32.totalorder %s28_s10, 0  ;;  %p38_p8 = scmp.ne.s32.totalorder %s891_s23, %s887_s22 }
  0x1b   : > { %p39_p9 = scmp.eq.s32.totalorder %s895_s24, 0  ;;  %p44_p10 = scmp.ne.s32.totalorder %s887_s22, %s883_s21 }
  0x1c   : > { %s1010_s13 = scalar_select %p29_p7, %s891_s23, %s31_s12  }
  0x1d   : > { %p1012_p11 = por %p39_p9, %p38_p8  ;;  %p1018_p12 = por %p45_p1, %p44_p10 }
  0x1e   : > { %p178_p13 = scmp.eq.s32.totalorder %s962_s28, 1  ;;  %p184_p0 = scmp.eq.s32.totalorder %s542_s8, 1 }
  0x1f   : > { %p624_p2 = scmp.lt.s32.totalorder %s895_s24, 2  ;;  %s254_s15 = sand.u32 1, %s891_s23  }
  0x20   : > { %p1025_p4 = por %p178_p13, %p38_p8  ;;  %p1029_p6 = por %p184_p0, %p44_p10 }
  0x21   : > { %s549_s18 = sshll.u32 %s254_s15, 1  ;;  %s550_s19 = sshll.u32 %s895_s24, 1 }
  0x22   : > { %s262_s26 = scalar_lea.hbm %s1113_s0, %s550_s19  ;;  %s258_s30 = scalar_lea.vmem [#allocation2], %s549_s18 }
  0x23   : > { %s266_s27 = sshll.u32 %s258_s30, 4  ;;  %s264_s7 = sshll.u32 %s262_s26, 4  ;;  %s267_s27 = int_to_ptr.vmem [resolvable:$true] %s266_s27  ;;  %s265_s7 = int_to_ptr.hbm [resolvable:$true] %s264_s7 }
  0x24   : > { %p1039_p7 = pnand %p624_p2, %p1012_p11  ;;  %s255_s10 = scalar_lea.sflag [#allocation3], %s254_s15 }
  0x25   : > { %s791_s12 = sshra.s32 %s265_s7, 4  ;;  %s798_s20 = scalar_lea.hbm %s1113_s0, 4  ;;  %s792_s12 = int_to_ptr.hbm [resolvable:$true] %s791_s12 }
  0x26   : > { %s793_s1 = scalar_lea.hbm %s792_s12, 2  ;;  %p795_p9 = pneg %p1039_p7 }
  0x27   : > { %p794_p8 = scmp.ne.s32.totalorder %s792_s12, %s793_s1  ;;  %p799_p11 = scmp.lt.s32.totalorder %s792_s12, %s1113_s0 }
  0x28   : > { %p800_p0 = scmp.lt.s32.totalorder %s798_s20, %s793_s1 }
  0x29   : > { %p796_p10 = pnand %p795_p9, %p794_p8 }
  0x2a   : > { %p801_p2 = por %p800_p0, %p799_p11 }
  0x2b   : > { %p797_p13 = pneg %p796_p10 }
  0x2d   : > { %p802_p5 = pnand %p801_p2, %p797_p13 }
  0x2f   : > { %805 = shalt.err (!%p802_p5)
}
  0x30   : > { %615 = dma.hbm_to_vmem [thread:$0]  (!%p1039_p7), %s265_s7, 32, %s267_s27, %s255_s10  }
  0x31   : > { %282 = sbr.rel (%p967_p3) target bundleno = 215 (0xd7), region = 44  ;;  %s1056_s15 = sand.u32 (!%p967_p3), 1, %s887_s22  }
  0x32   : > { %s552_s26 = sshll.u32 (!%p967_p3), %s1056_s15, 1  ;;  %s285_s30 = scalar_lea.sflag (!%p967_p3), [#allocation3], %s1056_s15 }
  0x33   : > { %s288_s18 = scalar_lea.vmem (!%p967_p3), [#allocation2], %s552_s26 }
  0x36   : > { %866 = dma.done.wait (%p1018_p12), %s285_s30, 32  }
  0x37   : > { %868 = vsyncadd (%p1018_p12), %s285_s30, 4294967264 }
  0x38   : > { %870 = dma.done.wait (%p45_p1), [#allocation6], 272  }
  0x39   : > { %872 = vsyncadd (%p45_p1), [#allocation6], 4294967024 }
  0x3a   : > { %874 = dma.done.wait (%p45_p1), [#allocation9], 32  }
  0x3b   : > { %876 = vsyncadd (%p45_p1), [#allocation9], 4294967264  ;;  %v573_v0 = vld [vmem:[#allocation5 + $0x8] sm:$0xff]  ;;  %v347_v1 = vld [vmem:[%s288_s18] sm:$0x3]  ;;  %vm367_vm0 = vcmask 261120  }
  0x3c   : > { %v348_v2 = vunpack.c.0.s8 %v347_v1  ;;  %377 = vmatpush.bf16.msra.mxu0 %v573_v0  ;;  %v572_v3 = vld [vmem:[#allocation5] sm:$0xff]  ;;  %p342_p3 = scmp.lt.s32.totalorder %s962_s28, 1  ;;  %v670_v8 = vld [vmem:[#allocation10] ss:$0 sm:$0xff]  ;;  %v668_v13 = vld [vmem:[#allocation7] ss:$0 sm:$0xff] }
  0x3d   : > { %v669_v16 = vld [vmem:[#allocation8] ss:$0 sm:$0xff]  ;;  %s557_s8 = sshll.u32 %s1056_s15, 3  ;;  %s569_s10 = sshll.u32 %s962_s28, 3 }
  0x3e   : > { %v349_v4 = vcvt.s32.f32 %v348_v2  ;;  %s343_s1 = scalar_select %p342_p3, %s962_s28, 1 }
  0x3f   : > { %s417_s20 = scalar_lea.hbm %s1119_s6, %s569_s10  ;;  %s341_s25 = scalar_lea.vmem [#allocation11], %s557_s8 }
  0x40   : > { %v350_v5 = vpack.c.bf16 %v349_v4, %v349_v4  ;;  %378 = vmatpush.bf16.msra.mxu0 %v572_v3  ;;  %s558_s29 = sshll.u32 %s343_s1, 1  ;;  %s419_s14 = sshll.u32 %s341_s25, 4  ;;  %s420_s14 = int_to_ptr.vmem [resolvable:$true] %s419_s14 }
  0x41   : > { %s345_s7 = scalar_lea.vmem %s1118_s5, %s558_s29  ;;  %s421_s26 = sshll.u32 %s417_s20, 4  ;;  %s422_s26 = int_to_ptr.hbm [resolvable:$true] %s421_s26 }
  0x42   : > { %v393_v6 = vld [vmem:[%s345_s7] sm:$0x3]  ;;  %s407_s28 = scalar_lea.sflag [#allocation4], %s1056_s15  ;;  %s835_s30 = sshra.s32 %s422_s26, 4  ;;  %s836_s30 = int_to_ptr.hbm [resolvable:$true] %s835_s30 }
  0x43   : > { %567 = vmatmul.msk.bf16.vlgmr.msra.gmra.mxu0 %vm367_vm0, %v350_v5  ;;  %v394_v7 = vunpack.c.0.s8 %v393_v6  ;;  %s837_s18 = scalar_lea.hbm %s836_s30, 8  ;;  %s841_s11 = scalar_lea.hbm %s1119_s6, 16 }
  0x44   : > { %p838_p1 = scmp.ne.s32.totalorder %s836_s30, %s837_s18  ;;  %p842_p7 = scmp.lt.s32.totalorder %s836_s30, %s1119_s6 }
  0x45   : > { %v396_v10 = vmul.u32 %v670_v8, %v394_v7  ;;  %p843_p8 = scmp.lt.s32.totalorder %s841_s11, %s837_s18 }
  0x46   : > { %p839_p5 = pnand %p838_p1, %p1025_p4 }
  0x47   : > { %v397_v17 = vadd.s32 128, %v396_v10  ;;  %p844_p9 = por %p843_p8, %p842_p7 }
  0x48   : > { %p840_p12 = pneg %p839_p5 }
  0x49   : > { %v398_v20 = vshra.s32 %v397_v17, 8 }
  0x4a   : > { %p845_p10 = pnand %p844_p9, %p840_p12 }
  0xc0   : > { %v380_v9 = vpop.f32.mrf.mxu0 }
  0xc1   : > { %vm574_vm1 = vcmp.lt.s32.totalorder %v380_v9, 0  ;;  %v575_v11 = vceil.f32 %v380_v9  ;;  %v576_v12 = vfloor.f32 %v380_v9 }
  0xc3   : > { %v577_v14 = vsel %vm574_vm1, %v575_v11, %v576_v12 }
  0xc4   : > { %v578_v15 = vcvt.f32.s32 %v577_v14 }
  0xc6   : > { %v387_v18 = vmul.u32 %v668_v13, %v578_v15 }
  0xc8   : > { %v390_v19 = vadd.s32 %v669_v16, %v387_v18  ;;  %v382_v21 = vpop.f32.mrf.mxu0 }
  0xca   : > { %v391_v22 = vshra.s32 %v390_v19, 8 }
  0xcc   : > { %v399_v23 = vadd.s32 %v398_v20, %v391_v22 }
  0xce   : > { %vm400_vm2 = vcmp.gt.s32.totalorder %v399_v23, 4294967169 }
  0xcf   : > { %v401_v24 = vsel %vm400_vm2, %v399_v23, 4294967169 }
  0xd0   : > { %vm402_vm3 = vcmp.lt.s32.totalorder %v401_v24, 127 }
  0xd1   : > { %v403_v25 = vsel %vm402_vm3, %v401_v24, 127 }
  0xd2   : > { %v404_v26 = vcvt.s32.f32 %v403_v25 }
  0xd4   : > { %405 = vst.msk [vmem:[%s341_s25] sm:$0xff] %vm367_vm0, %v404_v26 }
  0xd5   : > { %848 = shalt.err (!%p845_p10)
}
  0xd6   : > { %597 = dma.vmem_to_hbm [thread:$0]  (%p1025_p4), %s420_s14, 128, %s422_s26, %s407_s28  }
  0xd7 PF: > { %s433_s15 = sand.u32 1, %s883_s21   ;;  %p1129_p13 = scmp.ge.s32.totalorder %s895_s24, 2 }
  0xd8   : > { %s434_s8 = scalar_lea.sflag [#allocation4], %s433_s15 }
  0xd9   : > { %p617_p11 = pnand %p1129_p13, %p1029_p6 }
  0xdb   : > { %p618_p0 = pneg %p617_p11 }
  0xdd   : > { %878 = dma.done.wait (%p618_p0), %s434_s8, 128  }
  0xde   : > { %880 = vsyncadd (%p618_p0), %s434_s8, 4294967168  ;;  %p21_p2 = scmp.ge.s32.totalorder %s999_s9, 4   ;;  %s1130_s21 = smov %s887_s22 }
  0xdf   : > { %s1131_s22 = smov %s891_s23  ;;  %s1132_s23 = smov %s1010_s13 }
  0xe0   : > { %s1133_s24 = smov %s999_s9  ;;  %23 = sbr.rel (!%p21_p2) target bundleno = 9 (0x9), region = 108 }
  0xe5   :  { %440 = vsyncpa [#allocation3], 1 }
  0xe6   :  { %442 = vsyncpa [#allocation3 + $0x1], 1 }
  0xe7   :  { %443 = vsyncpa [#allocation6], 1 }
  0xe8   :  { %444 = vsyncpa [#allocation9], 1 }
  0xe9   :  { %445 = vsyncpa [#allocation4], 1 }
  0xea   :  { %447 = vsyncpa [#allocation4 + $0x1], 1 }

</bundles_post_ra>
